<compile_context>
chip_gen: v7x
topology: tpu7x:2x2x1
jax: 0.10.0
libtpu: 0.0.40
codegen_flags: <defaults>
</compile_context>

<pallas_src>
import functools
import math

import jax
import jax.numpy as jnp
from jax import lax
from jax.experimental import pallas as pl
from jax.experimental.pallas import tpu as pltpu


# ---------------------------------------------------------------------------
# Kernels
# ---------------------------------------------------------------------------
def _layernorm_kernel(x_ref, g_ref, b_ref, o_ref, *, eps, features):
    """Plain path: x_ref is (row_tile, features); one LayerNorm row per sublane row."""
    x = x_ref[...].astype(jnp.float32)

    # Two-pass mean / variance (robust against cancellation).
    mean = jnp.sum(x, axis=-1, keepdims=True) * jnp.float32(1.0 / features)
    d = x - mean
    # torch.Tensor.std() default: UNBIASED estimator (divide by N-1).
    var = jnp.sum(d * d, axis=-1, keepdims=True) * jnp.float32(1.0 / (features - 1))
    std = jnp.sqrt(var)

    denom = std + jnp.float32(eps)
    # Per-row reciprocal on the EUP + one Newton step -> full f32 accuracy.
    inv = pl.reciprocal(denom, approx=True)
    inv = inv * (jnp.float32(2.0) - denom * inv)

    o_ref[...] = (d * (g_ref[...] * inv) + b_ref[...]).astype(o_ref.dtype)


def _layernorm_packed_kernel(x_ref, g_ref, b_ref, seg_ref, o_ref, *, eps, features):
    """Lane-packed path: each kernel row holds `pack` original rows side by side.

    x_ref:   (row_tile, W) with W = pack * features (lane-dense multiple of 128).
    seg_ref: (pack, W) f32 one-hot segment matrix, seg[g, l] = 1 iff l // features == g.
    Segmented sums / broadcasts are expressed as small matmuls on the idle MXU,
    which avoids any in-kernel reshape / re-layout across the 128-lane boundary.
    """
    x = x_ref[...].astype(jnp.float32)
    seg = seg_ref[...]

    # s[r, g] = sum over the g-th lane segment of row r.
    s = lax.dot_general(x, seg, (((1,), (1,)), ((), ())),
                        preferred_element_type=jnp.float32)            # (R, pack)
    mean = s * jnp.float32(1.0 / features)
    mean_b = lax.dot_general(mean, seg, (((1,), (0,)), ((), ())),
                             preferred_element_type=jnp.float32)       # (R, W)
    d = x - mean_b
    varsum = lax.dot_general(d * d, seg, (((1,), (1,)), ((), ())),
                             preferred_element_type=jnp.float32)       # (R, pack)
    var = varsum * jnp.float32(1.0 / (features - 1))
    std = jnp.sqrt(var)

    denom = std + jnp.float32(eps)
    inv = pl.reciprocal(denom, approx=True)
    inv = inv * (jnp.float32(2.0) - denom * inv)
    inv_b = lax.dot_general(inv, seg, (((1,), (0,)), ((), ())),
                            preferred_element_type=jnp.float32)        # (R, W)

    o_ref[...] = (d * (g_ref[...] * inv_b) + b_ref[...]).astype(o_ref.dtype)


# ---------------------------------------------------------------------------
# Tiling / VMEM policy
# ---------------------------------------------------------------------------
def _tpu_config():
    """(io-block VMEM budget, vmem_limit_bytes, min grid steps) per TPU generation."""
    vmem = 128 << 20
    try:
        vmem = int(pltpu.get_tpu_info().vmem_capacity_bytes)
    except Exception:
        pass
    if vmem <= (96 << 20):
        # v7x-class: 64 MiB VMEM per TensorCore, 2 TCs per chip -> conservative
        # budget + >=4 grid steps so the "parallel" axis shards across both TCs.
        return 18 << 20, 36 << 20, 4
    # v5e / v6e: 128 MiB VMEM, single TensorCore -> go big, stay streaming.
    return 44 << 20, 80 << 20, 2


def _choose_row_tile(rows, features, in_dtype_bytes, *, vmem_budget_bytes, min_steps):
    """Largest row tile whose working set (incl. f32 temps) fits the VMEM budget.

    per_row ~= 2 (double-buffer) * 2 (in + out) * features * in_bytes
               + 3 * features * 4   (f32 intermediates: x_f32, d, y)
    """
    per_row = (2 * 2 * features * in_dtype_bytes) + 3 * features * 4
    tile = vmem_budget_bytes // max(per_row, 1)
    tile = max(8, min(int(tile), 1024))            # diminishing returns past ~1K rows
    # Keep at least `min_steps` grid steps when the problem is big enough
    # (DMA overlap everywhere; TensorCore sharding on v7x).  No ">=8 steps" clamp.
    if min_steps > 1 and rows >= 8 * min_steps:
        tile = min(tile, max(8, (pl.cdiv(rows, min_steps) // 8) * 8))
    tile = max(8, (tile // 8) * 8)                 # sublane multiple of 8
    if rows <= tile:
        return rows                                # single block == full array dim
    # TODO(synk): feature-chunked fallback (accumulate per-row sums across feature
    # tiles) for hidden sizes so large that even an 8-row block exceeds the budget.
    return tile


# ---------------------------------------------------------------------------
# Wrapper
# ---------------------------------------------------------------------------
def layer_norm(x, gamma, beta, eps=1e-6, row_tile=None):
    """Pallas LayerNorm matching the PyTorch module's forward semantics.

    x: (..., features); gamma, beta: (features,). Requires features >= 2
    (unbiased std of a single element is NaN in torch anyway).
    """
    features = x.shape[-1]
    assert features >= 2, "unbiased std requires features >= 2"
    lead_shape = x.shape[:-1]
    rows = int(math.prod(lead_shape)) if lead_shape else 1

    vmem_budget, vmem_limit, min_steps = _tpu_config()

    g32 = gamma.astype(jnp.float32).reshape(1, features)
    b32 = beta.astype(jnp.float32).reshape(1, features)

    # Lane-pack narrow / non-128-multiple feature dims (lane-dense, unmasked stores).
    pack = 1
    if features % 128 != 0:
        k = 128 // math.gcd(features, 128)   # smallest k with (k * features) % 128 == 0
        if 1 < k <= 32 and rows % k == 0:
            pack = k

    if pack > 1:
        width = pack * features
        rows_eff = rows // pack
        x2 = x.reshape(rows_eff, width)
        g2 = jnp.tile(g32, (1, pack))
        b2 = jnp.tile(b32, (1, pack))
        seg = (jnp.arange(width, dtype=jnp.int32)[None, :] // features
               == jnp.arange(pack, dtype=jnp.int32)[:, None]).astype(jnp.float32)
        kernel = functools.partial(_layernorm_packed_kernel, eps=eps, features=features)
        args = (x2, g2, b2, seg)
        tail_specs = [pl.BlockSpec((pack, width), lambda i: (0, 0))]
    else:
        width = features
        rows_eff = rows
        x2 = x.reshape(rows_eff, width)
        kernel = functools.partial(_layernorm_kernel, eps=eps, features=features)
        args = (x2, g32, b32)
        tail_specs = []

    if row_tile is None:
        rt = _choose_row_tile(rows_eff, width, x2.dtype.itemsize,
                              vmem_budget_bytes=vmem_budget, min_steps=min_steps)
    else:
        rt = row_tile

    grid = (pl.cdiv(rows_eff, rt),)
    in_specs = [pl.BlockSpec((rt, width), lambda i: (i, 0)),
                pl.BlockSpec((1, width), lambda i: (0, 0)),
                pl.BlockSpec((1, width), lambda i: (0, 0))] + tail_specs

    out = pl.pallas_call(
        kernel,
        out_shape=jax.ShapeDtypeStruct((rows_eff, width), x.dtype),
        grid_spec=pltpu.PrefetchScalarGridSpec(
            num_scalar_prefetch=0,
            grid=grid,
            in_specs=in_specs,
            out_specs=pl.BlockSpec((rt, width), lambda i: (i, 0)),
        ),
        compiler_params=pltpu.CompilerParams(
            dimension_semantics=("parallel",),
            vmem_limit_bytes=vmem_limit,
        ),
    )(*args)

    return out.reshape(*lead_shape, features)


# ---------------------------------------------------------------------------
# Reference + self-test
# ---------------------------------------------------------------------------
def _reference(x, gamma, beta, eps=1e-6):
    x32 = x.astype(jnp.float32)
    mean = jnp.mean(x32, axis=-1, keepdims=True)
    d = x32 - mean
    var = jnp.sum(d * d, axis=-1, keepdims=True) / (x.shape[-1] - 1)   # unbiased
    std = jnp.sqrt(var)
    y = gamma.astype(jnp.float32) * d / (std + eps) + beta.astype(jnp.float32)
    return y.astype(x.dtype)


if __name__ == "__main__":
    key = jax.random.PRNGKey(0)
    k1, k2 = jax.random.split(key)

    # Primary demo shape implied by the module: (batch=2, seq=8, hidden=32).
    batch, seq, hidden = 2, 8, 32
    x = jax.random.normal(k1, (batch, seq, hidden), dtype=jnp.float32)
    gamma = jnp.ones((hidden,), dtype=jnp.float32)   # nn.Parameter(torch.ones(features))
    beta = jnp.zeros((hidden,), dtype=jnp.float32)   # nn.Parameter(torch.zeros(features))

    y = jax.block_until_ready(layer_norm(x, gamma, beta, eps=1e-6))
    y_ref = _reference(x, gamma, beta, eps=1e-6)
    assert y.shape == x.shape
    assert jnp.max(jnp.abs(y - y_ref)) < 1e-3, "packed-path mismatch vs reference"

    # Secondary check: lane-dense (features % 128 == 0) path with a ragged grid.
    x2 = jax.random.normal(k2, (4, 5, 256), dtype=jnp.float32)
    g2 = jnp.ones((256,), dtype=jnp.float32)
    b2 = jnp.zeros((256,), dtype=jnp.float32)
    y2 = jax.block_until_ready(layer_norm(x2, g2, b2, eps=1e-6))
    y2_ref = _reference(x2, g2, b2, eps=1e-6)
    assert jnp.max(jnp.abs(y2 - y2_ref)) < 1e-3, "plain-path mismatch vs reference"

    print("KERNEL_OK")
</pallas_src>

<mosaic_0001>
module attributes {stable_mosaic.version = 11 : i64} {
  func.func @_layernorm_packed_kernel(%arg0: i32, %arg1: memref<4x128xf32, #tpu.memory_space<vmem>>, %arg2: memref<1x128xf32, #tpu.memory_space<vmem>>, %arg3: memref<1x128xf32, #tpu.memory_space<vmem>>, %arg4: memref<4x128xf32, #tpu.memory_space<vmem>>, %arg5: memref<4x128xf32, #tpu.memory_space<vmem>>) attributes {dimension_semantics = [#tpu.dimension_semantics<parallel>], iteration_bounds = array<i64: 1>, scalar_prefetch = 0 : i64, scratch_operands = 0 : i64, tpu.core_type = #tpu.core_type<tc>, window_params = [{transform_indices = @transform_0, window_bounds = array<i64: 4, 128>}, {pipeline_mode = #tpu.pipeline_mode<synchronous>, transform_indices = @transform_1, window_bounds = array<i64: 1, 128>}, {pipeline_mode = #tpu.pipeline_mode<synchronous>, transform_indices = @transform_2, window_bounds = array<i64: 1, 128>}, {pipeline_mode = #tpu.pipeline_mode<synchronous>, transform_indices = @transform_3, window_bounds = array<i64: 4, 128>}, {transform_indices = @transform_4, window_bounds = array<i64: 4, 128>}]} {
    %c0 = arith.constant 0 : index
    %c0_0 = arith.constant 0 : index
    %0 = vector.load %arg1[%c0, %c0_0] : memref<4x128xf32, #tpu.memory_space<vmem>>, vector<4x128xf32>
    %c0_1 = arith.constant 0 : index
    %c0_2 = arith.constant 0 : index
    %1 = vector.load %arg4[%c0_1, %c0_2] : memref<4x128xf32, #tpu.memory_space<vmem>>, vector<4x128xf32>
    %cst = arith.constant dense<0.000000e+00> : vector<4x4xf32>
    %2 = tpu.matmul %0, %1, %cst {dimension_numbers = #tpu.dot_dimension_numbers<[1], [1], [0], [0], [0, 0, 1, 0], [], []>} : vector<4x128xf32>, vector<4x128xf32>, vector<4x4xf32> -> vector<4x4xf32>
    %cst_3 = arith.constant 3.125000e-02 : f32
    %3 = vector.broadcast %cst_3 : f32 to vector<4x4xf32>
    %4 = arith.mulf %2, %3 : vector<4x4xf32>
    %cst_4 = arith.constant dense<0.000000e+00> : vector<4x128xf32>
    %5 = tpu.matmul %4, %1, %cst_4 {dimension_numbers = #tpu.dot_dimension_numbers<[1], [0], [0], [1], [0, 0, 1, 1], [], []>} : vector<4x4xf32>, vector<4x128xf32>, vector<4x128xf32> -> vector<4x128xf32>
    %6 = arith.subf %0, %5 : vector<4x128xf32>
    %7 = arith.mulf %6, %6 : vector<4x128xf32>
    %cst_5 = arith.constant dense<0.000000e+00> : vector<4x4xf32>
    %8 = tpu.matmul %7, %1, %cst_5 {dimension_numbers = #tpu.dot_dimension_numbers<[1], [1], [0], [0], [0, 0, 1, 0], [], []>} : vector<4x128xf32>, vector<4x128xf32>, vector<4x4xf32> -> vector<4x4xf32>
    %cst_6 = arith.constant 0.0322580636 : f32
    %9 = vector.broadcast %cst_6 : f32 to vector<4x4xf32>
    %10 = arith.mulf %8, %9 : vector<4x4xf32>
    %11 = math.sqrt %10 : vector<4x4xf32>
    %cst_7 = arith.constant 9.99999997E-7 : f32
    %12 = vector.broadcast %cst_7 : f32 to vector<4x4xf32>
    %13 = arith.addf %11, %12 : vector<4x4xf32>
    %14 = tpu.reciprocal %13 {approx = true} : vector<4x4xf32> -> vector<4x4xf32>
    %15 = arith.mulf %13, %14 : vector<4x4xf32>
    %cst_8 = arith.constant 2.000000e+00 : f32
    %16 = vector.broadcast %cst_8 : f32 to vector<4x4xf32>
    %17 = arith.subf %16, %15 : vector<4x4xf32>
    %18 = arith.mulf %14, %17 : vector<4x4xf32>
    %cst_9 = arith.constant dense<0.000000e+00> : vector<4x128xf32>
    %19 = tpu.matmul %18, %1, %cst_9 {dimension_numbers = #tpu.dot_dimension_numbers<[1], [0], [0], [1], [0, 0, 1, 1], [], []>} : vector<4x4xf32>, vector<4x128xf32>, vector<4x128xf32> -> vector<4x128xf32>
    %c0_10 = arith.constant 0 : index
    %c0_11 = arith.constant 0 : index
    %20 = vector.load %arg2[%c0_10, %c0_11] : memref<1x128xf32, #tpu.memory_space<vmem>>, vector<1x128xf32>
    %21 = vector.broadcast %20 : vector<1x128xf32> to vector<4x128xf32>
    %22 = arith.mulf %21, %19 : vector<4x128xf32>
    %23 = arith.mulf %6, %22 : vector<4x128xf32>
    %c0_12 = arith.constant 0 : index
    %c0_13 = arith.constant 0 : index
    %24 = vector.load %arg3[%c0_12, %c0_13] : memref<1x128xf32, #tpu.memory_space<vmem>>, vector<1x128xf32>
    %25 = vector.broadcast %24 : vector<1x128xf32> to vector<4x128xf32>
    %26 = arith.addf %23, %25 : vector<4x128xf32>
    %c0_14 = arith.constant 0 : index
    %c0_15 = arith.constant 0 : index
    %27 = vector.load %arg5[%c0_14, %c0_15] : memref<4x128xf32, #tpu.memory_space<vmem>>, vector<4x128xf32>
    tpu.vector_store %arg5[%c0_14, %c0_15], %26 {strides = array<i32>} : memref<4x128xf32, #tpu.memory_space<vmem>>, vector<4x128xf32>,
    return
  }
  func.func @transform_0(%arg0: i32) -> (i32, i32) {
    %c0_i32 = arith.constant 0 : i32
    %c0_i32_0 = arith.constant 0 : i32
    return %arg0, %c0_i32 : i32, i32
  }
  func.func @transform_1(%arg0: i32) -> (i32, i32) {
    %c0_i32 = arith.constant 0 : i32
    %c0_i32_0 = arith.constant 0 : i32
    %c0_i32_1 = arith.constant 0 : i32
    return %c0_i32, %c0_i32_0 : i32, i32
  }
  func.func @transform_2(%arg0: i32) -> (i32, i32) {
    %c0_i32 = arith.constant 0 : i32
    %c0_i32_0 = arith.constant 0 : i32
    %c0_i32_1 = arith.constant 0 : i32
    return %c0_i32, %c0_i32_0 : i32, i32
  }
  func.func @transform_3(%arg0: i32) -> (i32, i32) {
    %c0_i32 = arith.constant 0 : i32
    %c0_i32_0 = arith.constant 0 : i32
    %c0_i32_1 = arith.constant 0 : i32
    return %c0_i32, %c0_i32_0 : i32, i32
  }
  func.func @transform_4(%arg0: i32) -> (i32, i32) {
    %c0_i32 = arith.constant 0 : i32
    %c0_i32_0 = arith.constant 0 : i32
    return %arg0, %c0_i32 : i32, i32
  }
}

</mosaic_0001>

<bundles_post_ra>
// kernel: tpu_custom_call.1
= control target key start
LH: loop header
LB: loop body
LE: loop exit
PB: predicated region body
PF: predicated region fallthrough
CT: control target
= control target key end

     0   :  { %9 = vsyncpa [#allocation3], 0  ;;  %s670_s0 = inlined_call_operand.hbm [shape: f32[4,128], index: 0, kind: input, shape index: {}]   ;;  %s671_s1 = inlined_call_operand.hbm [shape: f32[1,128], index: 1, kind: input, shape index: {}]   ;;  %s672_s2 = inlined_call_operand.hbm [shape: f32[1,128], index: 2, kind: input, shape index: {}]   ;;  %s673_s3 = inlined_call_operand.hbm [shape: f32[4,128], index: 3, kind: input, shape index: {}]   ;;  %s674_s4 = inlined_call_operand.hbm [shape: f32[4,128], index: 4, kind: output, shape index: {}]  }
   0x1   :  { %10 = vsyncpa [#allocation6], 0 }
   0x2   :  { %11 = vsyncpa [#allocation9], 0 }
   0x3   :  { %12 = vsyncpa [#allocation4], 0  ;;  %s572_s15 = smov [#allocation5]   ;;  %s573_s17 = smov [#allocation2]  }
   0x4   :  { %s29_s16 = sshll.u32 %s572_s15, 4  ;;  %s19_s18 = sshll.u32 %s573_s17, 4  ;;  %s30_s16 = int_to_ptr.vmem [resolvable:$true] %s29_s16  ;;  %s20_s18 = int_to_ptr.vmem [resolvable:$true] %s19_s18 }
   0x5   :  { %s454_s21 = scalar_lea.hbm %s671_s1, 16 }
   0x6   :  { %p455_p0 = scmp.ne.s32.totalorder %s671_s1, %s454_s21  ;;  %p458_p1 = scmp.lt.u32.totalorder %s454_s21, %s671_s1 }
   0x8   :  { %p460_p2 = pnand %p458_p1, %p455_p0 }
   0xa   :  { %463 = shalt.err (!%p460_p2)
}
   0xb   :  { %s464_s26 = scalar_lea.vmem %s30_s16, 16  ;;  %s468_s27 = scalar_lea.vmem %s30_s16, 32 }
   0xc   :  { %p465_p3 = scmp.ne.s32.totalorder %s30_s16, %s464_s26  ;;  %p469_p4 = scmp.lt.s32.totalorder %s30_s16, %s30_s16 }
   0xd   :  { %p470_p5 = scmp.lt.s32.totalorder %s468_s27, %s464_s26 }
   0xf   :  { %p471_p6 = por %p470_p5, %p469_p4 }
  0x11   :  { %p472_p7 = pnand %p471_p6, %p465_p3 }
  0x13   :  { %475 = shalt.err (!%p472_p7)
}
  0x14   :  { %32 = dma.hbm_to_vmem [thread:$0]  %s671_s1, 16, %s30_s16, [#allocation6]  }
  0x15   :  { %s476_s6 = scalar_lea.hbm %s670_s0, 64 }
  0x16   :  { %p477_p8 = scmp.ne.s32.totalorder %s670_s0, %s476_s6  ;;  %p480_p9 = scmp.lt.u32.totalorder %s476_s6, %s670_s0 }
  0x18   :  { %p482_p10 = pnand %p480_p9, %p477_p8 }
  0x1a   :  { %485 = shalt.err (!%p482_p10)
}
  0x1b   :  { %s486_s11 = scalar_lea.vmem %s20_s18, 64  ;;  %p491_p12 = scmp.lt.s32.totalorder %s20_s18, %s20_s18 }
  0x1c   :  { %p487_p11 = scmp.ne.s32.totalorder %s20_s18, %s486_s11  ;;  %p492_p13 = scmp.lt.s32.totalorder %s486_s11, %s486_s11 }
  0x1e   :  { %p493_p0 = por %p492_p13, %p491_p12 }
  0x20   :  { %p494_p1 = pnand %p493_p0, %p487_p11 }
  0x22   :  { %497 = shalt.err (!%p494_p1)
}
  0x23   :  { %22 = dma.hbm_to_vmem [thread:$0]  %s670_s0, 64, %s20_s18, [#allocation3]  }
  0x24   :  { %s574_s13 = smov [#allocation7]   ;;  %s575_s15 = smov [#allocation8]  }
  0x25   :  { %s39_s14 = sshll.u32 %s574_s13, 4  ;;  %s49_s16 = sshll.u32 %s575_s15, 4  ;;  %s40_s14 = int_to_ptr.vmem [resolvable:$true] %s39_s14  ;;  %s50_s16 = int_to_ptr.vmem [resolvable:$true] %s49_s16 }
  0x26   :  { %s498_s20 = scalar_lea.hbm %s672_s2, 16 }
  0x27   :  { %p499_p2 = scmp.ne.s32.totalorder %s672_s2, %s498_s20  ;;  %p502_p3 = scmp.lt.u32.totalorder %s498_s20, %s672_s2 }
  0x29   :  { %p504_p4 = pnand %p502_p3, %p499_p2 }
  0x2b   :  { %507 = shalt.err (!%p504_p4)
}
  0x2c   :  { %s508_s0 = scalar_lea.vmem %s40_s14, 16  ;;  %s512_s18 = scalar_lea.vmem %s40_s14, 32 }
  0x2d   :  { %p509_p5 = scmp.ne.s32.totalorder %s40_s14, %s508_s0  ;;  %p513_p6 = scmp.lt.s32.totalorder %s40_s14, %s40_s14 }
  0x2e   :  { %p514_p7 = scmp.lt.s32.totalorder %s512_s18, %s508_s0 }
  0x30   :  { %p515_p8 = por %p514_p7, %p513_p6 }
  0x32   :  { %p516_p9 = pnand %p515_p8, %p509_p5 }
  0x34   :  { %519 = shalt.err (!%p516_p9)
}
  0x35   :  { %42 = dma.hbm_to_vmem [thread:$0]  %s672_s2, 16, %s40_s14, [#allocation6]  }
  0x36   :  { %s520_s29 = scalar_lea.hbm %s673_s3, 64 }
  0x37   :  { %p521_p10 = scmp.ne.s32.totalorder %s673_s3, %s520_s29  ;;  %p524_p11 = scmp.lt.u32.totalorder %s520_s29, %s673_s3 }
  0x39   :  { %p526_p12 = pnand %p524_p11, %p521_p10 }
  0x3b   :  { %529 = shalt.err (!%p526_p12)
}
  0x3c   :  { %s530_s8 = scalar_lea.vmem %s50_s16, 64  ;;  %p535_p0 = scmp.lt.s32.totalorder %s50_s16, %s50_s16 }
  0x3d   :  { %p531_p13 = scmp.ne.s32.totalorder %s50_s16, %s530_s8  ;;  %p536_p1 = scmp.lt.s32.totalorder %s530_s8, %s530_s8 }
  0x3f   :  { %p537_p2 = por %p536_p1, %p535_p0 }
  0x41   :  { %p538_p3 = pnand %p537_p2, %p531_p13 }
  0x43   :  { %541 = shalt.err (!%p538_p3)
}
  0x44   :  { %52 = dma.hbm_to_vmem [thread:$0]  %s673_s3, 64, %s50_s16, [#allocation9]  }
  0x45   :  { %564 = dma.done.wait [#allocation3], 64  }
  0x46   :  { %565 = vsyncadd [#allocation3], 4294967232 }
  0x47   :  { %566 = dma.done.wait [#allocation6], 32  }
  0x48   :  { %567 = vsyncadd [#allocation6], 4294967264 }
  0x49   :  { %568 = dma.done.wait [#allocation9], 64  }
  0x4a   :  { %569 = vsyncadd [#allocation9], 4294967232  ;;  %v576_v0 = vmov 0.0   ;;  %vm577_vm0 = vmmov 0   ;;  %v66_v1 = vld [vmem:[#allocation8] sm:$0xf] }
  0x4b   :  { %423 = vmatprep.subr.mxu0 %v576_v0  ;;  %425 = vmatprep.mubr.msk.f32.mxu0 %vm577_vm0, %v576_v0  ;;  %v65_v2 = vld [vmem:[#allocation2] sm:$0xf]  ;;  %vm142_vm1 = vcmask 1043456   ;;  %vm138_vm2 = vcmask 31744   ;;  %v413_v23 = vld [vmem:[#allocation5] ss:$0 sm:$0xff] }
  0x4c   :  { %428 = vmatprep.subr.mxu1 %v576_v0  ;;  %430 = vmatprep.mubr.msk.f32.mxu1 %vm577_vm0, %v576_v0  ;;  %v414_v27 = vld [vmem:[#allocation7] ss:$0 sm:$0xff]  ;;  %s578_s3 = smov [#allocation10]  }
  0x4d   :  { %424 = vmatpush3.xpose.msra.mxu0 %v66_v1  ;;  %429 = vmatpush3.msk.msra.mxu1 %vm142_vm1, %v66_v1  ;;  %s398_s10 = sshll.u32 %s578_s3, 4  ;;  %s399_s10 = int_to_ptr.vmem [resolvable:$true] %s398_s10 }
  0x4e   :  { %438 = vmatprep.subr.mxu0 %v576_v0  ;;  %433 = vmatprep.subr.mxu1 %v576_v0  ;;  %s542_s11 = scalar_lea.vmem %s399_s10, 64  ;;  %p547_p5 = scmp.lt.s32.totalorder %s399_s10, %s399_s10 }
  0x4f   :  { %p543_p4 = scmp.ne.s32.totalorder %s399_s10, %s542_s11  ;;  %p548_p6 = scmp.lt.s32.totalorder %s542_s11, %s542_s11 }
  0x50   :  { %426 = vmatmul.mubr.f32.vlgmr.msra.gmra.mrb[0].mxu0 %v65_v2 }
  0x51   :  { %440 = vmatprep.mubr.msk.f32.mxu0 %vm577_vm0, %v576_v0  ;;  %439 = vmatpush3.msk.msra.mxu0 %vm142_vm1, %v66_v1  ;;  %p549_p7 = por %p548_p6, %p547_p5 }
  0x53   :  { %p550_p8 = pnand %p549_p7, %p543_p4 }
 0x123   :  { %v133_v3 = vpop.f32.mrb[0].mxu0 }
 0x124   :  { %v137_v4 = vmul.f32 0.03125, %v133_v3  ;;  %v427_v5 = vpop.f32.mrb[1].mxu0 }
 0x126   :  { %431 = vmatmul.mubr.msk.f32.vlgmr.msra.gmra.mrb[0].mxu1 %vm138_vm2, %v137_v4 }
 0x127   :  { %434 = vmatpush3.xpose.msra.mxu1 %v66_v1  ;;  %435 = vmatprep.mubr.msk.f32.mxu1 %vm577_vm0, %v576_v0 }
 0x1f9   :  { %v212_v6 = vpop.f32.mrb[0].mxu1 }
 0x1fa   :  { %v216_v7 = vsub.f32 %v65_v2, %v212_v6  ;;  %v432_v8 = vpop.f32.mrb[1].mxu1 }
 0x1fc   :  { %v217_v9 = vmul.f32 %v216_v7, %v216_v7 }
 0x1fe   :  { %436 = vmatmul.mubr.f32.vlgmr.msra.gmra.mrb[2].mxu1 %v217_v9 }
 0x2d1   :  { %v284_v10 = vpop.f32.mrb[2].mxu1 }
 0x2d2   :  { %v288_v11 = vmul.f32 0.032258064, %v284_v10  ;;  %v437_v12 = vpop.f32.mrb[3].mxu1 }
 0x2d4   :  { %450 = vrsqrt.f32 %v288_v11  ;;  %vm291_vm3 = vcmp.eq.f32.partialorder %v288_v11, inf  ;;  %v294_v15 = vand.u32 2147483648, %v288_v11  ;;  %vm293_vm4 = vcmp.eq.f32.partialorder %v288_v11, 0.0 }
 0x2de   :  { %v451_v13 = vpop.eup %450 }
 0x2df   :  { %v290_v14 = vmul.f32 %v451_v13, %v288_v11 }
 0x2e1   :  { %v292_v16 = vsel %vm291_vm3, %v288_v11, %v290_v14 }
 0x2e2   :  { %v295_v17 = vsel %vm293_vm4, %v294_v15, %v292_v16 }
 0x2e3   :  { %v296_v18 = vadd.f32 1e-06, %v295_v17 }
 0x2e5   :  { %452 = vrcp.f32 %v296_v18 }
 0x2ef   :  { %v453_v19 = vpop.eup %452 }
 0x2f0   :  { %v298_v20 = vmul.f32 %v453_v19, %v296_v18 }
 0x2f2   :  { %v299_v21 = vsub.f32 2.0, %v298_v20 }
 0x2f4   :  { %v300_v22 = vmul.f32 %v453_v19, %v299_v21 }
 0x2f6   :  { %441 = vmatmul.mubr.msk.f32.vlgmr.msra.gmra.mrb[2].mxu0 %vm138_vm2, %v300_v22 }
 0x3c9   :  { %v370_v24 = vpop.f32.mrb[2].mxu0 }
 0x3ca   :  { %v381_v25 = vmul.f32 %v413_v23, %v370_v24  ;;  %v442_v26 = vpop.f32.mrb[3].mxu0 }
 0x3cc   :  { %v382_v28 = vmul.f32 %v381_v25, %v216_v7 }
 0x3ce   :  { %v390_v29 = vadd.f32 %v414_v27, %v382_v28 }
 0x3d0   :  { %391 = vst [vmem:[#allocation10] sm:$0xf] %v390_v29 }
 0x3d1   :  { %553 = shalt.err (!%p550_p8)
}
 0x3d2   :  { %s554_s13 = scalar_lea.hbm %s674_s4, 64 }
 0x3d3   :  { %p555_p9 = scmp.ne.s32.totalorder %s674_s4, %s554_s13  ;;  %p558_p10 = scmp.lt.u32.totalorder %s554_s13, %s674_s4 }
 0x3d5   :  { %p560_p11 = pnand %p558_p10, %p555_p9 }
 0x3d7   :  { %563 = shalt.err (!%p560_p11)
}
 0x3d8   :  { %401 = dma.vmem_to_hbm [thread:$0]  %s399_s10, 64, %s674_s4, [#allocation4]  }
 0x3d9   :  { %570 = dma.done.wait [#allocation4], 64  }
 0x3da   :  { %571 = vsyncadd [#allocation4], 4294967232 }
 0x3db   :  { %405 = vsyncpa [#allocation3], 1 }
 0x3dc   :  { %406 = vsyncpa [#allocation6], 1 }
 0x3dd   :  { %407 = vsyncpa [#allocation9], 1 }
 0x3de   :  { %408 = vsyncpa [#allocation4], 1 }

</bundles_post_ra>
